<compile_context>
chip_gen: v7x
topology: tpu7x:2x2x1
jax: 0.10.0
libtpu: 0.0.40
codegen_flags: <defaults>
</compile_context>

<pallas_src>
import functools

import numpy as np
import jax
import jax.numpy as jnp
from jax import lax
from jax.experimental import pallas as pl
from jax.experimental.pallas import tpu as pltpu


def _round_up(x, m):
    return ((x + m - 1) // m) * m


def _embedding_kernel(x_ref, idx_ref, w_cont_ref, w_cat_ref, out_ref, *, cat_offsets):
    """out = x @ W_cont (f32 pass-through) + onehot(idx) @ W_cat (bf16 MXU)."""
    x = x_ref[...]                        # (TB, input_dim) f32
    idx = idx_ref[...]                    # (TB, n_cat)     i32
    tb = x.shape[0]
    c_pad = w_cat_ref.shape[0]

    # One iota over the full categorical width.  Per-feature compares land in
    # disjoint blocks, so summing them reproduces the concatenated one-hot
    # without any lane-axis concatenate (pure VPU compares, no relayout).
    lane = lax.broadcasted_iota(jnp.int32, (tb, c_pad), 1)
    onehot = jnp.zeros((tb, c_pad), dtype=jnp.float32)
    for j, off in enumerate(cat_offsets):          # static unroll over features
        onehot = onehot + (lane == (idx[:, j:j + 1] + off)).astype(jnp.float32)
    onehot = onehot.astype(jnp.bfloat16)

    # Continuous pass-through: f32 0/1 routing, HIGHEST precision (exact copy).
    acc = jnp.dot(x, w_cont_ref[...],
                  preferred_element_type=jnp.float32,
                  precision=lax.Precision.HIGHEST)
    # Categorical lookup: bf16 operands (MXU-native), f32 accumulation.
    acc = acc + jnp.dot(onehot, w_cat_ref[...],
                        preferred_element_type=jnp.float32)
    out_ref[...] = acc.astype(out_ref.dtype)       # one lane-dense full-tile store


class EmbeddingGeneratorPallas:
    """JAX/Pallas port of the PyTorch EmbeddingGenerator module."""

    def __init__(self, input_dim, cat_dims, cat_idxs, cat_emb_dim, key):
        if cat_dims == [] or cat_idxs == []:
            self.skip_embedding = True
            self.post_embed_dim = int(input_dim)
            return
        self.skip_embedding = False
        self.input_dim = int(input_dim)

        if isinstance(cat_emb_dim, int):
            cat_emb_dims = [cat_emb_dim] * len(cat_idxs)
        else:
            cat_emb_dims = list(cat_emb_dim)
        if len(cat_emb_dims) != len(cat_dims):
            raise ValueError("cat_emb_dim and cat_dims must be lists of same length")

        self.post_embed_dim = int(input_dim + np.sum(cat_emb_dims) - len(cat_emb_dims))

        # Same reordering as the PyTorch module: tables in ascending cat_idxs order.
        sorted_idxs = np.argsort(cat_idxs)
        cat_dims_sorted = [int(cat_dims[i]) for i in sorted_idxs]
        cat_emb_dims_sorted = [int(cat_emb_dims[i]) for i in sorted_idxs]
        cat_idxs_sorted = [int(cat_idxs[i]) for i in sorted_idxs]
        self.cat_dims_sorted = cat_dims_sorted
        self.cat_emb_dims = cat_emb_dims_sorted
        self.cat_idxs_sorted = np.asarray(cat_idxs_sorted, dtype=np.int32)

        # N(0,1) init (matches torch.nn.Embedding default dist); parameters are
        # stored bf16 (MXU-native, halves resident-weight VMEM & HBM traffic).
        keys = jax.random.split(key, len(cat_dims_sorted))
        self.tables = [
            jax.random.normal(k, (cd, ed), dtype=jnp.float32).astype(jnp.bfloat16)
            for k, cd, ed in zip(keys, cat_dims_sorted, cat_emb_dims_sorted)
        ]

        continuous_idx = np.ones(input_dim, dtype=bool)
        continuous_idx[np.asarray(cat_idxs)] = False
        self.continuous_idx = tuple(bool(b) for b in continuous_idx)

        # ---- Build the split fused weights once at init ----
        C = int(np.sum(cat_dims_sorted))
        self.cat_width = C
        self.c_pad = _round_up(max(C, 16), 16)                    # bf16 sublane packing
        self.p_pad = _round_up(max(self.post_embed_dim, 128), 128)  # lane-dense stores

        w_cont = np.zeros((input_dim, self.p_pad), dtype=np.float32)
        w_cat = np.zeros((self.c_pad, self.p_pad), dtype=np.float32)
        cat_offsets = []
        out_off = 0
        row_off = 0
        cc = 0
        for feat_idx, is_cont in enumerate(self.continuous_idx):
            if is_cont:
                w_cont[feat_idx, out_off] = 1.0                   # pass-through
                out_off += 1
            else:
                cd = cat_dims_sorted[cc]
                ed = cat_emb_dims_sorted[cc]
                w_cat[row_off:row_off + cd, out_off:out_off + ed] = \
                    np.asarray(self.tables[cc], dtype=np.float32)
                cat_offsets.append(row_off)
                row_off += cd
                out_off += ed
                cc += 1
        self.cat_offsets = tuple(int(o) for o in cat_offsets)
        self.w_cont = jnp.asarray(w_cont)                         # (input_dim, P_pad) f32
        self.w_cat = jnp.asarray(w_cat).astype(jnp.bfloat16)      # (C_pad, P_pad)   bf16
        # TODO(synk): for very large vocabularies (4*C*P >> half of VMEM, esp. v7x 64MiB)
        # add a K-tiled reduction grid axis with a VMEM accumulator, or keep the tables
        # in HBM (memory_space=pl.ANY) and gather rows by DMA instead of one-hot matmul.

    def __call__(self, x):
        if self.skip_embedding:
            return x
        x = jnp.asarray(x, dtype=jnp.float32)
        B, input_dim = x.shape
        n_cat = len(self.cat_dims_sorted)
        P = self.post_embed_dim
        P_pad = self.p_pad
        C_pad = self.c_pad

        # int32 categorical indices, extracted once in the wrapper
        # (truncation toward zero matches torch .long() for valid inputs).
        idx = x[:, jnp.asarray(self.cat_idxs_sorted)].astype(jnp.int32)   # (B, n_cat)

        # ---- Generation-aware VMEM budget ----
        try:
            vmem_cap = int(pltpu.get_tpu_info().vmem_capacity_bytes)
        except Exception:
            vmem_cap = 64 << 20
        budget = (vmem_cap * 3) // 4            # headroom for compiler scratch

        weight_bytes = 2 * (4 * input_dim * P_pad + 2 * C_pad * P_pad)    # 2 bufs each
        per_row_pipe = 2 * 4 * (input_dim + n_cat + P_pad)                # double-buffered
        per_row_tmp = 6 * C_pad + 4 * P_pad                               # onehot + acc
        avail = budget - weight_bytes - (4 << 20)
        tb_cap = max(8, (avail // max(per_row_pipe + per_row_tmp, 1)) // 8 * 8)
        tb_cap = min(tb_cap, 4096)

        B_pad8 = _round_up(B, 8)
        # Cap TB at ~half the batch so the "parallel" grid has >=2 steps (v7x dual TC).
        half = _round_up(max(pl.cdiv(B_pad8, 2), 8), 8)
        TB = int(min(tb_cap, half))
        grid_b = pl.cdiv(B_pad8, TB)
        B_full = grid_b * TB

        if B_full != B:
            pad_rows = B_full - B
            x = jnp.pad(x, ((0, pad_rows), (0, 0)))
            idx = jnp.pad(idx, ((0, pad_rows), (0, 0)))

        kernel = functools.partial(_embedding_kernel, cat_offsets=self.cat_offsets)

        needed = weight_bytes + (per_row_pipe + per_row_tmp) * TB + (8 << 20)
        vmem_limit = int(min(max(needed, 32 << 20), budget))

        cost = pl.CostEstimate(
            flops=2 * B_full * (input_dim + C_pad) * P_pad,
            transcendentals=0,
            bytes_accessed=(4 * B_full * (input_dim + n_cat + P_pad)
                            + 4 * input_dim * P_pad + 2 * C_pad * P_pad),
        )

        out = pl.pallas_call(
            kernel,
            out_shape=jax.ShapeDtypeStruct((B_full, P_pad), jnp.float32),
            grid=(grid_b,),
            in_specs=[
                pl.BlockSpec((TB, input_dim), lambda i: (i, 0)),
                pl.BlockSpec((TB, n_cat), lambda i: (i, 0)),
                # Constant index maps: weights stay VMEM-resident across grid steps.
                pl.BlockSpec((input_dim, P_pad), lambda i: (0, 0)),
                pl.BlockSpec((C_pad, P_pad), lambda i: (0, 0)),
            ],
            out_specs=pl.BlockSpec((TB, P_pad), lambda i: (i, 0)),
            compiler_params=pltpu.CompilerParams(
                dimension_semantics=("parallel",),
                vmem_limit_bytes=vmem_limit,
            ),
            cost_estimate=cost,
        )(x, idx, self.w_cont, self.w_cat)

        # Drop batch padding rows and lane-padding columns.
        return out[:B, :P]


if __name__ == "__main__":
    key = jax.random.PRNGKey(0)
    k_x, k_cat, k_emb = jax.random.split(key, 3)

    # Small shapes consistent with the module's forward: (batch, input_dim).
    B, input_dim = 16, 8
    cat_idxs = [1, 4, 6]
    cat_dims = [5, 7, 3]
    cat_emb_dim = 3
    # post_embed_dim = 8 + (3+3+3) - 3 = 14

    # Mixed input: continuous floats; categorical columns hold integer-valued
    # floats (as in the PyTorch usage, cast with .long()).
    x = jax.random.normal(k_x, (B, input_dim), dtype=jnp.float32)
    cat_keys = jax.random.split(k_cat, len(cat_idxs))
    for ci, cd, ck in zip(cat_idxs, cat_dims, cat_keys):
        cats = jax.random.randint(ck, (B,), 0, cd).astype(jnp.float32)
        x = x.at[:, ci].set(cats)

    model = EmbeddingGeneratorPallas(input_dim, cat_dims, cat_idxs, cat_emb_dim, k_emb)
    out = jax.block_until_ready(model(x))

    # Pure-JAX reference (same bf16-stored tables, exact lookup semantics).
    cols = []
    cc = 0
    for fi, is_cont in enumerate(model.continuous_idx):
        if is_cont:
            cols.append(x[:, fi:fi + 1])
        else:
            tbl = model.tables[cc].astype(jnp.float32)
            cols.append(tbl[x[:, fi].astype(jnp.int32)])
            cc += 1
    ref = jnp.concatenate(cols, axis=1)

    assert out.shape == (B, model.post_embed_dim), out.shape
    np.testing.assert_allclose(np.asarray(out), np.asarray(ref),
                               rtol=1e-5, atol=1e-5)
    print("KERNEL_OK")
</pallas_src>

<mosaic_0001>
module attributes {stable_mosaic.version = 11 : i64} {
  func.func @_embedding_kernel(%arg0: i32, %arg1: memref<8x8xf32, #tpu.memory_space<vmem>>, %arg2: memref<8x3xi32, #tpu.memory_space<vmem>>, %arg3: memref<8x128xf32, #tpu.memory_space<vmem>>, %arg4: memref<16x128xbf16, #tpu.memory_space<vmem>>, %arg5: memref<8x128xf32, #tpu.memory_space<vmem>>) attributes {dimension_semantics = [#tpu.dimension_semantics<parallel>], iteration_bounds = array<i64: 2>, scalar_prefetch = 0 : i64, scratch_operands = 0 : i64, tpu.core_type = #tpu.core_type<tc>, window_params = [{transform_indices = @transform_0, window_bounds = array<i64: 8, 8>}, {transform_indices = @transform_1, window_bounds = array<i64: 8, 3>}, {pipeline_mode = #tpu.pipeline_mode<synchronous>, transform_indices = @transform_2, window_bounds = array<i64: 8, 128>}, {pipeline_mode = #tpu.pipeline_mode<synchronous>, transform_indices = @transform_3, window_bounds = array<i64: 16, 128>}, {transform_indices = @transform_4, window_bounds = array<i64: 8, 128>}]} {
    %c0 = arith.constant 0 : index
    %c0_0 = arith.constant 0 : index
    %0 = vector.load %arg1[%c0, %c0_0] : memref<8x8xf32, #tpu.memory_space<vmem>>, vector<8x8xf32>
    %c0_1 = arith.constant 0 : index
    %c0_2 = arith.constant 0 : index
    %1 = vector.load %arg2[%c0_1, %c0_2] : memref<8x3xi32, #tpu.memory_space<vmem>>, vector<8x3xi32>
    %2 = tpu.iota {dimensions = array<i32: 1>} : vector<8x16xi32>
    %cst = arith.constant 0.000000e+00 : f32
    %3 = vector.broadcast %cst : f32 to vector<8x16xf32>
    %4 = vector.extract_strided_slice %1 {offsets = [0, 0], sizes = [8, 1], strides = [1, 1]} : vector<8x3xi32> to vector<8x1xi32>
    %c0_i32 = arith.constant 0 : i32
    %5 = vector.broadcast %c0_i32 : i32 to vector<8x1xi32>
    %6 = arith.addi %4, %5 : vector<8x1xi32>
    %7 = vector.broadcast %6 : vector<8x1xi32> to vector<8x16xi32>
    %8 = arith.cmpi eq, %2, %7 : vector<8x16xi32>
    %9 = arith.extui %8 : vector<8x16xi1> to vector<8x16xi32>
    %10 = arith.sitofp %9 : vector<8x16xi32> to vector<8x16xf32>
    %11 = arith.addf %3, %10 : vector<8x16xf32>
    %12 = vector.extract_strided_slice %1 {offsets = [0, 1], sizes = [8, 1], strides = [1, 1]} : vector<8x3xi32> to vector<8x1xi32>
    %c5_i32 = arith.constant 5 : i32
    %13 = vector.broadcast %c5_i32 : i32 to vector<8x1xi32>
    %14 = arith.addi %12, %13 : vector<8x1xi32>
    %15 = vector.broadcast %14 : vector<8x1xi32> to vector<8x16xi32>
    %16 = arith.cmpi eq, %2, %15 : vector<8x16xi32>
    %17 = arith.extui %16 : vector<8x16xi1> to vector<8x16xi32>
    %18 = arith.sitofp %17 : vector<8x16xi32> to vector<8x16xf32>
    %19 = arith.addf %11, %18 : vector<8x16xf32>
    %20 = vector.extract_strided_slice %1 {offsets = [0, 2], sizes = [8, 1], strides = [1, 1]} : vector<8x3xi32> to vector<8x1xi32>
    %c12_i32 = arith.constant 12 : i32
    %21 = vector.broadcast %c12_i32 : i32 to vector<8x1xi32>
    %22 = arith.addi %20, %21 : vector<8x1xi32>
    %23 = vector.broadcast %22 : vector<8x1xi32> to vector<8x16xi32>
    %24 = arith.cmpi eq, %2, %23 : vector<8x16xi32>
    %25 = arith.extui %24 : vector<8x16xi1> to vector<8x16xi32>
    %26 = arith.sitofp %25 : vector<8x16xi32> to vector<8x16xf32>
    %27 = arith.addf %19, %26 : vector<8x16xf32>
    %28 = arith.truncf %27 : vector<8x16xf32> to vector<8x16xbf16>
    %c0_3 = arith.constant 0 : index
    %c0_4 = arith.constant 0 : index
    %29 = vector.load %arg3[%c0_3, %c0_4] : memref<8x128xf32, #tpu.memory_space<vmem>>, vector<8x128xf32>
    %cst_5 = arith.constant dense<0.000000e+00> : vector<8x128xf32>
    %30 = tpu.matmul %0, %29, %cst_5 {dimension_numbers = #tpu.dot_dimension_numbers<[1], [0], [0], [1], [0, 0, 1, 1], [], []>, precision = #tpu.contract_precision<fp32>} : vector<8x8xf32>, vector<8x128xf32>, vector<8x128xf32> -> vector<8x128xf32>
    %c0_6 = arith.constant 0 : index
    %c0_7 = arith.constant 0 : index
    %31 = vector.load %arg4[%c0_6, %c0_7] : memref<16x128xbf16, #tpu.memory_space<vmem>>, vector<16x128xbf16>
    %cst_8 = arith.constant dense<0.000000e+00> : vector<8x128xf32>
    %32 = tpu.matmul %28, %31, %cst_8 {dimension_numbers = #tpu.dot_dimension_numbers<[1], [0], [0], [1], [0, 0, 1, 1], [], []>} : vector<8x16xbf16>, vector<16x128xbf16>, vector<8x128xf32> -> vector<8x128xf32>
    %33 = arith.addf %30, %32 : vector<8x128xf32>
    %c0_9 = arith.constant 0 : index
    %c0_10 = arith.constant 0 : index
    %34 = vector.load %arg5[%c0_9, %c0_10] : memref<8x128xf32, #tpu.memory_space<vmem>>, vector<8x128xf32>
    tpu.vector_store %arg5[%c0_9, %c0_10], %33 {strides = array<i32>} : memref<8x128xf32, #tpu.memory_space<vmem>>, vector<8x128xf32>,
    return
  }
  func.func @transform_0(%arg0: i32) -> (i32, i32) {
    %c0_i32 = arith.constant 0 : i32
    %c0_i32_0 = arith.constant 0 : i32
    return %arg0, %c0_i32 : i32, i32
  }
  func.func @transform_1(%arg0: i32) -> (i32, i32) {
    %c0_i32 = arith.constant 0 : i32
    %c0_i32_0 = arith.constant 0 : i32
    return %arg0, %c0_i32 : i32, i32
  }
  func.func @transform_2(%arg0: i32) -> (i32, i32) {
    %c0_i32 = arith.constant 0 : i32
    %c0_i32_0 = arith.constant 0 : i32
    %c0_i32_1 = arith.constant 0 : i32
    return %c0_i32, %c0_i32_0 : i32, i32
  }
  func.func @transform_3(%arg0: i32) -> (i32, i32) {
    %c0_i32 = arith.constant 0 : i32
    %c0_i32_0 = arith.constant 0 : i32
    %c0_i32_1 = arith.constant 0 : i32
    return %c0_i32, %c0_i32_0 : i32, i32
  }
  func.func @transform_4(%arg0: i32) -> (i32, i32) {
    %c0_i32 = arith.constant 0 : i32
    %c0_i32_0 = arith.constant 0 : i32
    return %arg0, %c0_i32 : i32, i32
  }
}

</mosaic_0001>

<bundles_post_ra>
// kernel: tpu_custom_call.1
= control target key start
LH: loop header
LB: loop body
LE: loop exit
PB: predicated region body
PF: predicated region fallthrough
CT: control target
= control target key end

     0   :  { %9 = vsyncpa [#allocation3], 0  ;;  %s1185_s0 = inlined_call_operand.vmem [shape: f32[16,8], index: 0, kind: input, shape index: {}]   ;;  %s1186_s1 = inlined_call_operand.vmem [shape: s32[16,3], index: 1, kind: input, shape index: {}]   ;;  %s1187_s2 = inlined_call_operand.vmem [shape: f32[8,128], index: 2, kind: input, shape index: {}]   ;;  %s1188_s3 = inlined_call_operand.vmem [shape: bf16[16,128], index: 3, kind: input, shape index: {}]   ;;  %s1189_s4 = inlined_call_operand.hbm [shape: f32[16,128], index: 4, kind: output, shape index: {}]  }
   0x1   :  { %11 = vsyncpa [#allocation3 + $0x1], 0  ;;  %s1046_s15 = smov 0   ;;  %s1048_s16 = smov 0  }
   0x2   :  { %s1050_s17 = smov 0   ;;  %s1052_s18 = smov 0  }
   0x3 LB: > { %s1067_s19 = sadd.s32 4294967295, %s1013_s18   ;;  %s828_s20 = sadd.s32 4294967294, %s1013_s18   ;;  %s1013_s18 = sphi %s1052_s18, %s1195_s18   ;;  %s1009_s17 = sphi %s1050_s17, %s1194_s17   ;;  %s1005_s16 = sphi %s1048_s16, %s1193_s16   ;;  %s1001_s15 = sphi %s1046_s15, %s1192_s15  }
   0x4   : > { %s1071_s21 = sadd.s32 1, %s1013_s18   ;;  %s118_s22 = sadd.s32 1, %s1009_s17 }
   0x5   : > { %s115_s23 = ssub.s32 %s1013_s18, %s1071_s21  ;;  %p128_p0 = scmp.ne.s32.totalorder %s1009_s17, %s1005_s16 }
   0x6   : > { %p116_p1 = scmp.eq.s32.totalorder %s115_s23, 0  ;;  %p129_p2 = scmp.eq.s32.totalorder %s1067_s19, 1 }
   0x7   : > { %p134_p3 = scmp.ne.s32.totalorder %s1005_s16, %s1001_s15  ;;  %p135_p4 = scmp.eq.s32.totalorder %s828_s20, 1 }
   0x8   : > { %s1082_s24 = scalar_select %p116_p1, %s1009_s17, %s118_s22  }
   0x9   : > { %p1084_p5 = por %p129_p2, %p128_p0  ;;  %p1088_p6 = por %p135_p4, %p134_p3 }
   0xa   : > { %p831_p7 = scmp.ge.s32.totalorder %s1013_s18, 1  ;;  %p173_p8 = scmp.lt.s32.totalorder %s1013_s18, 3 }
   0xc   : > { %p174_p9 = pnand %p831_p7, %p173_p8 }
   0xd   : > { %p202_p10 = scmp.lt.s32.totalorder (!%p174_p9), %s1067_s19, 1  ;;  %v239_v0 = vld [vmem:[%s1187_s2] sm:$0xff] (!%p174_p9)  ;;  %v1015_v1 = vmov (!%p174_p9), 0   ;;  %v1016_v2 = vmov (!%p174_p9), 2   ;;  %v1017_v4 = vmov (!%p174_p9), 0.0   ;;  %vm1018_vm0 = vmmov (!%p174_p9), 0  }
   0xe   : > { %177 = sbr.rel (%p174_p9) target bundleno = 409 (0x199), region = 36  ;;  %946 = vset.pattern.permute.xlu0 (!%p174_p9), %v1015_v1  ;;  %948 = vset.pattern.permute.xlu1 (!%p174_p9), %v1016_v2  ;;  %v1098_v3 = vand.u32 (!%p174_p9), 4294901760, %v239_v0  ;;  %vm292_vm1 = vcmask (!%p174_p9), 64512   ;;  %v1019_v13 = vmov (!%p174_p9), 1   ;;  %v950_v14 = vld [vmem:[%s1188_s3] sm:$0xff] (!%p174_p9)   ;;  %v213_v19 = vlaneseq (!%p174_p9)  ;;  %s199_s13 = sand.u32 (!%p174_p9), 1, %s1005_s16  }
   0xf   : > { %874 = vmatprep.subr.mxu1 (!%p174_p9), %v1017_v4  ;;  %876 = vmatprep.mubr.msk.f32.mxu1 (!%p174_p9), %vm1018_vm0, %v1017_v4  ;;  %vm248_vm5 = vcmask (!%p174_p9), 130048   ;;  %s832_s14 = sshll.u32 (!%p174_p9), %s199_s13, 3  ;;  %s841_s20 = sshll.u32 (!%p174_p9), %s1067_s19, 7 }
  0x10   : > { %v374_v5 = vsub.f32 (!%p174_p9), %v239_v0, %v1098_v3  ;;  %858 = vmatprep.subr.bf16.mxu0 (!%p174_p9), %v1017_v4  ;;  %860 = vmatprep.mubr.msk.bf16.mxu0 (!%p174_p9), %vm1018_vm0, %v1017_v4  ;;  %v214_v20 = vand.u32 (!%p174_p9), 127, %v213_v19  ;;  %s201_s22 = scalar_lea.vmem (!%p174_p9), [#allocation2], %s832_s14 }
  0x11   : > { %859 = vmatpush3.bf16.msra.mxu0 (!%p174_p9), %v950_v14  ;;  %s757_s23 = sshll.u32 (!%p174_p9), %s201_s22, 4  ;;  %s1145_s23 = int_to_ptr.vmem [resolvable:$true] %s757_s23 }
  0x12   : > { %875 = vmatpush3.msra.mxu1 (!%p174_p9), %v374_v5  ;;  %v375_v16 = vand.u32 (!%p174_p9), 4294901760, %v374_v5  ;;  %864 = vmatprep.subr.mxu0 (!%p174_p9), %v1017_v4  ;;  %s951_s5 = scalar_lea.vmem (!%p174_p9), %s1145_s23, 128 }
  0x13   : > { %879 = vmatprep.subr.mxu1 (!%p174_p9), %v1017_v4  ;;  %p952_p11 = scmp.ne.s32.totalorder (!%p174_p9), %s1145_s23, %s951_s5 }
  0x14   : > { %v376_v18 = vsub.f32 (!%p174_p9), %v374_v5, %v375_v16 }
  0x15   : > { %s203_s29 = scalar_select %p202_p10, %s1067_s19, 1 }
  0x16   : > { %v377_v31 = vand.u32 4294901760, %v376_v18  ;;  %p953_p12 = pnand %p952_p11, %p1084_p5  ;;  %s1020_s19 = smov [#allocation2]  }
  0x17   : > { %s833_s30 = sshll.u32 %s203_s29, 3  ;;  %s1143_s29 = scalar_lea.hbm %s1189_s4, %s841_s20 }
  0x18   : > { %s209_s7 = scalar_lea.vmem %s1186_s1, %s833_s30  ;;  %s205_s10 = scalar_lea.vmem %s1185_s0, %s833_s30 }
  0x19   : > { %v212_v6 = vld [vmem:[%s209_s7] sm:$0xff]  ;;  %s744_s30 = scalar_lea.sflag [#allocation3], %s199_s13  ;;  %p954_p13 = pneg %p953_p12 }
  0x1a   : > { %v211_v7 = vld [vmem:[%s205_s10] sm:$0xff]  ;;  %216 = vperm.xlu0 %946, %v212_v6   ;;  %v230_v8 = vadd.s32 12, %v212_v6  ;;  %v222_v10 = vadd.s32 5, %v212_v6  ;;  %s955_s6 = sshll.u32 %s1020_s19, 4  ;;  %s956_s6 = int_to_ptr.vmem [resolvable:$false] %s955_s6 }
  0x1b   : > { %v294_v9 = vsel %vm292_vm1, %v211_v7, 0  ;;  %s957_s7 = scalar_lea.vmem %s956_s6, 256  ;;  %p958_p0 = scmp.lt.s32.totalorder %s1145_s23, %s956_s6 }
  0x1c   : > { %v362_v11 = vand.u32 4294901760, %v294_v9  ;;  %232 = vperm.xlu1 %948, %v230_v8   ;;  %p959_p1 = scmp.lt.s32.totalorder %s957_s7, %s951_s5 }
  0x1e   : > { %v363_v12 = vsub.f32 %v294_v9, %v362_v11  ;;  %947 = vset.pattern.permute.xlu0 %v1019_v13  ;;  %p960_p2 = por %p959_p1, %p958_p0 }
  0x1f   : > { %224 = vperm.xlu0 %947, %v222_v10  }
  0x20   : > { %877 = vmatmul.mubr.f32.vlgmr.msra.gmra.mrb[0].mxu1 %v363_v12  ;;  %v364_v15 = vand.u32 4294901760, %v363_v12  ;;  %p961_p3 = pnand %p960_p2, %p954_p13 }
  0x21   : > { %880 = vmatpush3.msra.mxu1 %v1098_v3  ;;  %881 = vmatprep.mubr.msk.f32.mxu1 %vm1018_vm0, %v1017_v4 }
  0x22   : > { %884 = vmatprep.subr.mxu1 %v1017_v4  ;;  %v365_v17 = vsub.f32 %v363_v12, %v364_v15 }
  0x23   : > { %949 = vset.pattern.permute.xlu0 %v1016_v2 }
  0x24   : > { %v366_v30 = vand.u32 4294901760, %v365_v17 }
  0x28   : > { %882 = vmatmul.mubr.f32.vlgmr.msra.gmra.mrb[0].mxu1 %v364_v15 }
  0x29   : > { %885 = vmatpush3.msra.mxu1 %v375_v16  ;;  %886 = vmatprep.mubr.msk.f32.mxu1 %vm1018_vm0, %v1017_v4 }
  0x2a   : > { %889 = vmatprep.subr.mxu1 %v1017_v4 }
  0x30   : > { %887 = vmatmul.mubr.f32.vlgmr.msra.gmra.mrb[0].mxu1 %v362_v11 }
  0x31   : > { %890 = vmatpush3.msra.mxu1 %v1098_v3  ;;  %891 = vmatprep.mubr.msk.f32.mxu1 %vm1018_vm0, %v1017_v4 }
  0x38   : > { %892 = vmatmul.mubr.f32.vlgmr.msra.gmra.mrb[0].mxu1 %v362_v11 }
  0x99   : > { %v217_v21 = vpop.permute.xlu0 %216 }
  0x9a   : > { %vm218_vm2 = vcmp.eq.s32.totalorder %v214_v20, %v217_v21 }
  0x9b   : > { %v233_v22 = vpop.permute.xlu1 %232  ;;  %v835_v24 = vsel %vm218_vm2, 1.0, %v1017_v4 }
  0x9c   : > { %vm234_vm3 = vcmp.eq.s32.totalorder %v214_v20, %v233_v22 }
  0x9d   : > { %v837_v26 = vsel %vm234_vm3, 1.0, %v1017_v4 }
  0x9e   : > { %v225_v23 = vpop.permute.xlu0 %224 }
  0x9f   : > { %vm226_vm4 = vcmp.eq.s32.totalorder %v214_v20, %v225_v23 }
  0xa0   : > { %v836_v25 = vsel %vm226_vm4, 1.0, %v1017_v4 }
  0xa1   : > { %v229_v27 = vadd.f32 %v836_v25, %v835_v24 }
  0xa3   : > { %v237_v28 = vadd.f32 %v837_v26, %v229_v27 }
  0xa5   : > { %v238_v29 = vpack.c.bf16 %v237_v28, %v237_v28 }
  0xa7   : > { %861 = vmatmul.mubr.msk.bf16.vlgmr.msra.gmra.mrb[0].mxu0 %vm248_vm5, %v238_v29 }
  0xa8   : > { %865 = vmatpush3.msra.mxu0 %v1098_v3  ;;  %866 = vmatprep.mubr.msk.f32.mxu0 %vm1018_vm0, %v1017_v4 }
  0xa9   : > { %869 = vmatprep.subr.mxu0 %v1017_v4 }
  0xaf   : > { %867 = vmatmul.mubr.f32.vlgmr.msra.gmra.mrb[4].mxu0 %v366_v30 }
  0xb0   : > { %870 = vmatpush3.msra.mxu0 %v377_v31  ;;  %871 = vmatprep.mubr.msk.f32.mxu0 %vm1018_vm0, %v1017_v4 }
  0xb3   : > { %872 = vmatmul.mubr.f32.vlgmr.msra.gmra.mrb[6].mxu0 %v362_v11 }
 0x10b   : > { %v738_v32 = vpop.f32.mrb[0].mxu1 }
 0x10c   : > { %v893_v33 = vpop.f32.mrb[1].mxu1 }
 0x17a   : > { %v286_v34 = vpop.f32.mrb[0].mxu0 }
 0x17b   : > { %v862_v35 = vpop.f32.mrb[1].mxu0 }
 0x17c   : > { %v289_v36 = vpop.f32.mrb[2].mxu0 }
 0x17d   : > { %v863_v37 = vpop.f32.mrb[3].mxu0 }
 0x182   : > { %v368_v38 = vpop.f32.mrb[4].mxu0 }
 0x183   : > { %v369_v39 = vadd.f32 %v368_v38, %v286_v34  ;;  %v868_v40 = vpop.f32.mrb[5].mxu0 }
 0x186   : > { %v444_v41 = vpop.f32.mrb[6].mxu0 }
 0x187   : > { %v445_v42 = vadd.f32 %v444_v41, %v369_v39  ;;  %v873_v43 = vpop.f32.mrb[7].mxu0 }
 0x189   : > { %v895_v44 = vadd.f32 %v738_v32, %v445_v42 }
 0x18b   : > { %742 = vst [vmem:[%s201_s22] sm:$0xff] %v895_v44 }
 0x18c   : > { %964 = shalt.err (!%p961_p3)
}
 0x18d   : > { %s965_s8 = scalar_lea.hbm %s1143_s29, 128  ;;  %s969_s11 = scalar_lea.hbm %s1189_s4, 256 }
 0x18e   : > { %p966_p4 = scmp.ne.s32.totalorder %s1143_s29, %s965_s8  ;;  %p970_p9 = scmp.lt.u32.totalorder %s1143_s29, %s1189_s4 }
 0x18f   : > { %p971_p10 = scmp.lt.u32.totalorder %s969_s11, %s965_s8  ;;  %p973_p12 = scmp.lt.u32.totalorder %s965_s8, %s1143_s29 }
 0x190   : > { %p967_p7 = pnand %p966_p4, %p1084_p5 }
 0x191   : > { %p972_p11 = por %p971_p10, %p970_p9 }
 0x192   : > { %p968_p8 = pneg %p967_p7 }
 0x193   : > { %p974_p13 = por %p973_p12, %p972_p11 }
 0x195   : > { %p975_p0 = pnand %p974_p13, %p968_p8 }
 0x197   : > { %978 = shalt.err (!%p975_p0)
}
 0x198   : > { %902 = dma.vmem_to_hbm [thread:$0]  (%p1084_p5), %s1145_s23, 128, %s1143_s29, %s744_s30  }
 0x199 PF: > { %p908_p1 = scmp.ge.s32.totalorder %s1013_s18, 2  ;;  %s769_s14 = sand.u32 1, %s1001_s15  }
 0x19a   : > { %s770_s20 = scalar_lea.sflag [#allocation3], %s769_s14 }
 0x19b   : > { %p905_p2 = pnand %p908_p1, %p1088_p6 }
 0x19d   : > { %996 = dma.done.wait (!%p905_p2), %s770_s20, 128  }
 0x19e   : > { %998 = vsyncadd (!%p905_p2), %s770_s20, 4294967168  ;;  %p14_p3 = scmp.ge.s32.totalorder %s1071_s21, 4   ;;  %s1192_s15 = smov %s1005_s16 }
 0x19f   : > { %s1193_s16 = smov %s1009_s17  ;;  %s1194_s17 = smov %s1082_s24 }
 0x1a0   : > { %s1195_s18 = smov %s1071_s21  ;;  %16 = sbr.rel (!%p14_p3) target bundleno = 3 (0x3), region = 74 }
 0x1a7   :  { %775 = vsyncpa [#allocation3], 1 }
 0x1a8   :  { %777 = vsyncpa [#allocation3 + $0x1], 1 }

</bundles_post_ra>
